<compile_context>
chip_gen: v7x
topology: tpu7x:2x2x1
jax: 0.10.0
libtpu: 0.0.40
codegen_flags: <defaults>
</compile_context>

<pallas_src>
import functools
import math

import jax
import jax.numpy as jnp
from jax.experimental import pallas as pl
from jax.experimental.pallas import tpu as pltpu


_TB_MAX = 4096  # batch tile for the gridded path (fits v5e/v6e/v7x VMEM budgets)


def _round_up(x, m):
    return ((x + m - 1) // m) * m


def _mlp_kernel(x_ref, w1_ref, b1_ref, w2_ref, b2_ref, o_ref):
    # x:(TB,F) w1:(F,Hp) b1:(1,Hp) w2:(Hp,Op) b2:(1,Op) o:(TB,Op)
    x = x_ref[...]
    h = jnp.dot(x, w1_ref[...], preferred_element_type=jnp.float32)   # MXU, f32 acc
    h = h + b1_ref[...]                                               # f32 bias add
    h = h.astype(w2_ref.dtype)                                        # bf16 path: re-narrow
    y = jnp.dot(h, w2_ref[...], preferred_element_type=jnp.float32)   # MXU, f32 acc
    y = y + b2_ref[...]
    o_ref[...] = y.astype(o_ref.dtype)


def prepare_params(w1, b1, w2, b2, compute_dtype=jnp.float32):
    """Run ONCE at init. Transposes PyTorch-layout (out,in) weights to (in,out),
    zero-pads hidden/output dims to multiples of 128 (lane-dense), and 2D-ifies
    biases (kept in f32). Zero padding leaves real logits exactly unchanged.

    Returns (params_dict_of_arrays, out_features).
    """
    hidden, in_features = w1.shape
    out_features = w2.shape[0]
    h_pad = _round_up(hidden, 128)
    o_pad = _round_up(out_features, 128)

    w1_t = jnp.zeros((in_features, h_pad), compute_dtype)
    w1_t = w1_t.at[:, :hidden].set(w1.T.astype(compute_dtype))
    b1_p = jnp.zeros((1, h_pad), jnp.float32)
    b1_p = b1_p.at[:, :hidden].set(b1.astype(jnp.float32)[None, :])
    w2_t = jnp.zeros((h_pad, o_pad), compute_dtype)
    w2_t = w2_t.at[:hidden, :out_features].set(w2.T.astype(compute_dtype))
    b2_p = jnp.zeros((1, o_pad), jnp.float32)
    b2_p = b2_p.at[:, :out_features].set(b2.astype(jnp.float32)[None, :])

    params = {"w1": w1_t, "b1": b1_p, "w2": w2_t, "b2": b2_p}
    return params, out_features


@functools.partial(jax.jit, static_argnames=("out_features",))
def fashion_mnist_model_v0(x_nchw, params, *, out_features):
    """Forward pass: Flatten -> Linear -> Linear.

    x_nchw : (B, C, H, W)
    params : dict from prepare_params (pre-transposed, 128-padded weights/biases)
    returns: (B, out_features) float32
    """
    w1, b1, w2, b2 = params["w1"], params["b1"], params["w2"], params["b2"]
    compute_dtype = w1.dtype
    in_features = w1.shape[0]
    h_pad = w1.shape[1]
    o_pad = w2.shape[1]

    B = x_nchw.shape[0]
    F = math.prod(x_nchw.shape[1:])
    assert F == in_features, "input feature count must match Linear in_features"

    # nn.Flatten() equivalent (NCHW row-major reshape matches exactly)
    x_flat = x_nchw.reshape(B, F).astype(compute_dtype)

    # Pad batch: to 8 sublanes for tiny B (single block), or to a multiple of the
    # batch tile for the gridded streaming path.
    if B <= _TB_MAX:
        tb = _round_up(max(B, 8), 8)
        b_pad = tb
    else:
        tb = _TB_MAX
        b_pad = _round_up(B, tb)
    if b_pad != B:
        x_flat = jnp.pad(x_flat, ((0, b_pad - B), (0, 0)))

    grid = (b_pad // tb,)

    itemsize = jnp.dtype(compute_dtype).itemsize
    flops = 2 * b_pad * (F * h_pad + h_pad * o_pad)
    bytes_accessed = (
        b_pad * F * itemsize                      # x stream
        + (F * h_pad + h_pad * o_pad) * itemsize  # weights (resident, read once)
        + (h_pad + o_pad) * 4                     # biases
        + b_pad * o_pad * 4                       # output
    )

    out = pl.pallas_call(
        _mlp_kernel,
        out_shape=jax.ShapeDtypeStruct((b_pad, o_pad), jnp.float32),
        grid_spec=pltpu.PrefetchScalarGridSpec(
            num_scalar_prefetch=0,
            grid=grid,
            in_specs=[
                pl.BlockSpec((tb, F), lambda i: (i, 0)),        # x: streamed over batch
                pl.BlockSpec((F, h_pad), lambda i: (0, 0)),     # w1: resident
                pl.BlockSpec((1, h_pad), lambda i: (0, 0)),     # b1: resident
                pl.BlockSpec((h_pad, o_pad), lambda i: (0, 0)), # w2: resident
                pl.BlockSpec((1, o_pad), lambda i: (0, 0)),     # b2: resident
            ],
            out_specs=pl.BlockSpec((tb, o_pad), lambda i: (i, 0)),
        ),
        compiler_params=pltpu.CompilerParams(
            dimension_semantics=("parallel",),
        ),
        cost_estimate=pl.CostEstimate(
            flops=flops, transcendentals=0, bytes_accessed=bytes_accessed),
    )(x_flat, w1, b1, w2, b2)

    # Strip batch / lane padding back to the logical logits.
    return out[:B, :out_features]


def init_params(key, input_features, output_features, hidden_units):
    """Deterministic init mimicking nn.Linear default (uniform +/- 1/sqrt(fan_in)),
    in PyTorch (out, in) layout."""
    k1, k2, k3, k4 = jax.random.split(key, 4)
    bound1 = 1.0 / (input_features ** 0.5)
    bound2 = 1.0 / (hidden_units ** 0.5)
    w1 = jax.random.uniform(k1, (hidden_units, input_features),
                            minval=-bound1, maxval=bound1, dtype=jnp.float32)
    b1 = jax.random.uniform(k2, (hidden_units,),
                            minval=-bound1, maxval=bound1, dtype=jnp.float32)
    w2 = jax.random.uniform(k3, (output_features, hidden_units),
                            minval=-bound2, maxval=bound2, dtype=jnp.float32)
    b2 = jax.random.uniform(k4, (output_features,),
                            minval=-bound2, maxval=bound2, dtype=jnp.float32)
    return w1, b1, w2, b2


if __name__ == "__main__":
    # Small shapes consistent with the module: grayscale 16x16 "images",
    # input_features = 1*16*16 = 256, hidden_units = 32, output_features = 10.
    B, C, H, W = 2, 1, 16, 16
    input_features = C * H * W
    hidden_units = 32
    output_features = 10

    key = jax.random.PRNGKey(0)
    kx, kp = jax.random.split(key)
    x = jax.random.normal(kx, (B, C, H, W), dtype=jnp.float32)
    w1, b1, w2, b2 = init_params(kp, input_features, output_features, hidden_units)
    x_flat = x.reshape(B, -1)

    # --- f32 compute path (exact vs. plain-JAX reference) ---
    params_f32, out_f = prepare_params(w1, b1, w2, b2, compute_dtype=jnp.float32)
    y = jax.block_until_ready(
        fashion_mnist_model_v0(x, params_f32, out_features=out_f))
    ref = (x_flat @ w1.T + b1) @ w2.T + b2
    assert y.shape == (B, output_features)
    assert jnp.allclose(y, ref, atol=1e-4, rtol=1e-4)

    # --- bf16 inputs + f32 accumulation path (native MXU dtype on v6e/v7x) ---
    params_bf16, _ = prepare_params(w1, b1, w2, b2, compute_dtype=jnp.bfloat16)
    y_bf16 = jax.block_until_ready(
        fashion_mnist_model_v0(x, params_bf16, out_features=out_f))
    h_ref = jnp.dot(x_flat.astype(jnp.bfloat16), w1.T.astype(jnp.bfloat16),
                    preferred_element_type=jnp.float32) + b1
    ref_bf16 = jnp.dot(h_ref.astype(jnp.bfloat16), w2.T.astype(jnp.bfloat16),
                       preferred_element_type=jnp.float32) + b2
    assert y_bf16.shape == (B, output_features)
    assert jnp.allclose(y_bf16, ref_bf16, atol=2e-2, rtol=2e-2)

    print("KERNEL_OK")
</pallas_src>

<mosaic_0001>
module attributes {stable_mosaic.version = 11 : i64} {
  func.func @_mlp_kernel(%arg0: i32, %arg1: memref<8x256xf32, #tpu.memory_space<vmem>>, %arg2: memref<256x128xf32, #tpu.memory_space<vmem>>, %arg3: memref<1x128xf32, #tpu.memory_space<vmem>>, %arg4: memref<128x128xf32, #tpu.memory_space<vmem>>, %arg5: memref<1x128xf32, #tpu.memory_space<vmem>>, %arg6: memref<8x128xf32, #tpu.memory_space<vmem>>) attributes {dimension_semantics = [#tpu.dimension_semantics<parallel>], iteration_bounds = array<i64: 1>, scalar_prefetch = 0 : i64, scratch_operands = 0 : i64, tpu.core_type = #tpu.core_type<tc>, window_params = [{transform_indices = @transform_0, window_bounds = array<i64: 8, 256>}, {pipeline_mode = #tpu.pipeline_mode<synchronous>, transform_indices = @transform_1, window_bounds = array<i64: 256, 128>}, {pipeline_mode = #tpu.pipeline_mode<synchronous>, transform_indices = @transform_2, window_bounds = array<i64: 1, 128>}, {pipeline_mode = #tpu.pipeline_mode<synchronous>, transform_indices = @transform_3, window_bounds = array<i64: 128, 128>}, {pipeline_mode = #tpu.pipeline_mode<synchronous>, transform_indices = @transform_4, window_bounds = array<i64: 1, 128>}, {transform_indices = @transform_5, window_bounds = array<i64: 8, 128>}]} {
    %c0 = arith.constant 0 : index
    %c0_0 = arith.constant 0 : index
    %0 = vector.load %arg1[%c0, %c0_0] : memref<8x256xf32, #tpu.memory_space<vmem>>, vector<8x256xf32>
    %c0_1 = arith.constant 0 : index
    %c0_2 = arith.constant 0 : index
    %1 = vector.load %arg2[%c0_1, %c0_2] : memref<256x128xf32, #tpu.memory_space<vmem>>, vector<256x128xf32>
    %cst = arith.constant dense<0.000000e+00> : vector<8x128xf32>
    %2 = tpu.matmul %0, %1, %cst {dimension_numbers = #tpu.dot_dimension_numbers<[1], [0], [0], [1], [0, 0, 1, 1], [], []>} : vector<8x256xf32>, vector<256x128xf32>, vector<8x128xf32> -> vector<8x128xf32>
    %c0_3 = arith.constant 0 : index
    %c0_4 = arith.constant 0 : index
    %3 = vector.load %arg3[%c0_3, %c0_4] : memref<1x128xf32, #tpu.memory_space<vmem>>, vector<1x128xf32>
    %4 = vector.broadcast %3 : vector<1x128xf32> to vector<8x128xf32>
    %5 = arith.addf %2, %4 : vector<8x128xf32>
    %c0_5 = arith.constant 0 : index
    %c0_6 = arith.constant 0 : index
    %6 = vector.load %arg4[%c0_5, %c0_6] : memref<128x128xf32, #tpu.memory_space<vmem>>, vector<128x128xf32>
    %cst_7 = arith.constant dense<0.000000e+00> : vector<8x128xf32>
    %7 = tpu.matmul %5, %6, %cst_7 {dimension_numbers = #tpu.dot_dimension_numbers<[1], [0], [0], [1], [0, 0, 1, 1], [], []>} : vector<8x128xf32>, vector<128x128xf32>, vector<8x128xf32> -> vector<8x128xf32>
    %c0_8 = arith.constant 0 : index
    %c0_9 = arith.constant 0 : index
    %8 = vector.load %arg5[%c0_8, %c0_9] : memref<1x128xf32, #tpu.memory_space<vmem>>, vector<1x128xf32>
    %9 = vector.broadcast %8 : vector<1x128xf32> to vector<8x128xf32>
    %10 = arith.addf %7, %9 : vector<8x128xf32>
    %c0_10 = arith.constant 0 : index
    %c0_11 = arith.constant 0 : index
    %11 = vector.load %arg6[%c0_10, %c0_11] : memref<8x128xf32, #tpu.memory_space<vmem>>, vector<8x128xf32>
    tpu.vector_store %arg6[%c0_10, %c0_11], %10 {strides = array<i32>} : memref<8x128xf32, #tpu.memory_space<vmem>>, vector<8x128xf32>,
    return
  }
  func.func @transform_0(%arg0: i32) -> (i32, i32) {
    %c0_i32 = arith.constant 0 : i32
    %c0_i32_0 = arith.constant 0 : i32
    return %arg0, %c0_i32 : i32, i32
  }
  func.func @transform_1(%arg0: i32) -> (i32, i32) {
    %c0_i32 = arith.constant 0 : i32
    %c0_i32_0 = arith.constant 0 : i32
    %c0_i32_1 = arith.constant 0 : i32
    return %c0_i32, %c0_i32_0 : i32, i32
  }
  func.func @transform_2(%arg0: i32) -> (i32, i32) {
    %c0_i32 = arith.constant 0 : i32
    %c0_i32_0 = arith.constant 0 : i32
    %c0_i32_1 = arith.constant 0 : i32
    return %c0_i32, %c0_i32_0 : i32, i32
  }
  func.func @transform_3(%arg0: i32) -> (i32, i32) {
    %c0_i32 = arith.constant 0 : i32
    %c0_i32_0 = arith.constant 0 : i32
    %c0_i32_1 = arith.constant 0 : i32
    return %c0_i32, %c0_i32_0 : i32, i32
  }
  func.func @transform_4(%arg0: i32) -> (i32, i32) {
    %c0_i32 = arith.constant 0 : i32
    %c0_i32_0 = arith.constant 0 : i32
    %c0_i32_1 = arith.constant 0 : i32
    return %c0_i32, %c0_i32_0 : i32, i32
  }
  func.func @transform_5(%arg0: i32) -> (i32, i32) {
    %c0_i32 = arith.constant 0 : i32
    %c0_i32_0 = arith.constant 0 : i32
    return %arg0, %c0_i32 : i32, i32
  }
}

</mosaic_0001>

<bundles_post_ra>
// kernel: fashion_mnist_model_v0.1
= control target key start
LH: loop header
LB: loop body
LE: loop exit
PB: predicated region body
PF: predicated region fallthrough
CT: control target
= control target key end

     0   :  { %10 = vsyncpa [#allocation3], 0  ;;  %s543_s0 = inlined_call_operand.vmem [shape: f32[8,256], index: 0, kind: input, shape index: {}]   ;;  %s544_s1 = inlined_call_operand.hbm [shape: f32[256,128], index: 1, kind: input, shape index: {}]   ;;  %s545_s2 = inlined_call_operand.vmem [shape: f32[1,128], index: 2, kind: input, shape index: {}]   ;;  %s546_s3 = inlined_call_operand.hbm [shape: f32[128,128], index: 3, kind: input, shape index: {}]   ;;  %s547_s4 = inlined_call_operand.vmem [shape: f32[1,128], index: 4, kind: input, shape index: {}]   ;;  %s548_s5 = inlined_call_operand.vmem [shape: f32[8,128], index: 5, kind: output, shape index: {}]  }
   0x1   :  { %11 = vsyncpa [#allocation5], 0  ;;  %s459_s18 = smov [#allocation2]   ;;  %s411_s22 = scalar_lea.hbm %s544_s1, 4096 }
   0x2   :  { %s19_s19 = sshll.u32 %s459_s18, 4  ;;  %p412_p0 = scmp.ne.s32.totalorder %s544_s1, %s411_s22  ;;  %s20_s19 = int_to_ptr.vmem [resolvable:$true] %s19_s19 }
   0x3   :  { %p415_p1 = scmp.lt.u32.totalorder %s411_s22, %s544_s1 }
   0x5   :  { %p417_p2 = pnand %p415_p1, %p412_p0 }
   0x7   :  { %420 = shalt.err (!%p417_p2)
}
   0x8   :  { %s421_s27 = scalar_lea.vmem %s20_s19, 4096  ;;  %p426_p4 = scmp.lt.s32.totalorder %s20_s19, %s20_s19 }
   0x9   :  { %p422_p3 = scmp.ne.s32.totalorder %s20_s19, %s421_s27  ;;  %p427_p5 = scmp.lt.s32.totalorder %s421_s27, %s421_s27 }
   0xb   :  { %p428_p6 = por %p427_p5, %p426_p4 }
   0xd   :  { %p429_p7 = pnand %p428_p6, %p422_p3 }
   0xf   :  { %432 = shalt.err (!%p429_p7)
}
  0x10   :  { %s460_s28 = smov 128   ;;  %s461_s29 = smov 8  }
  0x11   :  { %25 = dma.hbm_to_vmem [thread:$0]  %s544_s1, 4096, %s20_s19, [#allocation3], %s460_s28, %s460_s28, %s461_s29  }
  0x12   :  { %s462_s7 = smov [#allocation4]   ;;  %s433_s11 = scalar_lea.hbm %s546_s3, 2048 }
  0x13   :  { %s33_s8 = sshll.u32 %s462_s7, 4  ;;  %p434_p8 = scmp.ne.s32.totalorder %s546_s3, %s433_s11  ;;  %s34_s8 = int_to_ptr.vmem [resolvable:$true] %s33_s8 }
  0x14   :  { %p437_p9 = scmp.lt.u32.totalorder %s433_s11, %s546_s3 }
  0x16   :  { %p439_p10 = pnand %p437_p9, %p434_p8 }
  0x18   :  { %442 = shalt.err (!%p439_p10)
}
  0x19   :  { %s443_s16 = scalar_lea.vmem %s34_s8, 2048  ;;  %p448_p12 = scmp.lt.s32.totalorder %s34_s8, %s34_s8 }
  0x1a   :  { %p444_p11 = scmp.ne.s32.totalorder %s34_s8, %s443_s16  ;;  %p449_p13 = scmp.lt.s32.totalorder %s443_s16, %s443_s16 }
  0x1c   :  { %p450_p0 = por %p449_p13, %p448_p12 }
  0x1e   :  { %p451_p1 = pnand %p450_p0, %p444_p11 }
  0x20   :  { %454 = shalt.err (!%p451_p1)
}
  0x21   :  { %39 = dma.hbm_to_vmem [thread:$0]  %s546_s3, 2048, %s34_s8, [#allocation5], %s460_s28, %s460_s28, %s461_s29  }
  0x22   :  { %455 = dma.done.wait [#allocation3], 4096  }
  0x23   :  { %456 = vsyncadd [#allocation3], 4294963200 }
  0x24   :  { %457 = dma.done.wait [#allocation5], 2048  }
  0x25   :  { %458 = vsyncadd [#allocation5], 4294965248  ;;  %v463_v0 = vmov 0.0|0.0   ;;  %v66_v1 = vld [vmem:[#allocation2 + $0x80] sm:$0xff]  ;;  %v67_v2 = vld [vmem:[#allocation2 + $0x88] sm:$0xff]  ;;  %vm464_vm0 = vmmov 0  }
  0x26   :  { %380 = vmatprep.subr.bf16.mxu1 %v463_v0  ;;  %v50_v3 = vld [vmem:[#allocation2] sm:$0xff]  ;;  %v348_v4 = vpack.c.bf16 %v67_v2, %v66_v1  ;;  %v51_v5 = vld [vmem:[#allocation2 + $0x8] sm:$0xff]  ;;  %v68_v6 = vld [vmem:[#allocation2 + $0x90] sm:$0xff] }
  0x27   :  { %v69_v7 = vld [vmem:[#allocation2 + $0x98] sm:$0xff]  ;;  %v350_v8 = vpack.c.bf16 %v51_v5, %v50_v3  ;;  %v52_v10 = vld [vmem:[#allocation2 + $0x10] sm:$0xff]  ;;  %v70_v12 = vld [vmem:[#allocation2 + $0xa0] sm:$0xff] }
  0x28   :  { %v352_v9 = vpack.c.bf16 %v69_v7, %v68_v6  ;;  %v53_v11 = vld [vmem:[#allocation2 + $0x18] sm:$0xff]  ;;  %349 = vmatprep.subr.bf16.mxu0 %v348_v4  ;;  %v71_v13 = vld [vmem:[#allocation2 + $0xa8] sm:$0xff]  ;;  %v54_v16 = vld [vmem:[#allocation2 + $0x20] sm:$0xff] }
  0x29   :  { %351 = vmatpush3.bf16.msra.mxu0 %v350_v8  ;;  %v354_v14 = vpack.c.bf16 %v53_v11, %v52_v10  ;;  %v356_v15 = vpack.c.bf16 %v71_v13, %v70_v12  ;;  %v55_v17 = vld [vmem:[#allocation2 + $0x28] sm:$0xff]  ;;  %v72_v18 = vld [vmem:[#allocation2 + $0xb0] sm:$0xff]  ;;  %v73_v19 = vld [vmem:[#allocation2 + $0xb8] sm:$0xff]  ;;  %v465_v12 = vmov 0.0  }
  0x2a   :  { %353 = vmatprep.subr.bf16.mxu0 %v352_v9  ;;  %v358_v20 = vpack.c.bf16 %v55_v17, %v54_v16  ;;  %v360_v21 = vpack.c.bf16 %v73_v19, %v72_v18  ;;  %v56_v22 = vld [vmem:[#allocation2 + $0x30] sm:$0xff]  ;;  %v57_v23 = vld [vmem:[#allocation2 + $0x38] sm:$0xff]  ;;  %v74_v24 = vld [vmem:[#allocation2 + $0xc0] sm:$0xff]  ;;  %345 = vmatprep.mubr.msk.f32.mxu1 %vm464_vm0, %v465_v12 }
  0x2b   :  { %v75_v25 = vld [vmem:[#allocation2 + $0xc8] sm:$0xff]  ;;  %v159_v27 = vld [vmem:[#allocation4] sm:$0xff]  ;;  %v362_v29 = vpack.c.bf16 %v57_v23, %v56_v22  ;;  %v161_v31 = vld [vmem:[#allocation4 + $0x10] sm:$0xff] }
  0x2c   :  { %v49_v26 = vld [vmem:[%s543_s0 + $0x8] sm:$0xff]  ;;  %v162_v32 = vld [vmem:[#allocation4 + $0x18] sm:$0xff]  ;;  %v364_v33 = vpack.c.bf16 %v75_v25, %v74_v24  ;;  %v58_v34 = vld [vmem:[#allocation2 + $0x40] sm:$0xff] }
  0x2d   :  { %355 = vmatpush3.bf16.msra.mxu0 %v354_v14  ;;  %153 = vmatprep.mubr.f32.mxu0 %v49_v26  ;;  %v160_v28 = vld [vmem:[#allocation4 + $0x8] sm:$0xff]  ;;  %v76_v36 = vld [vmem:[#allocation2 + $0xd0] sm:$0xff]  ;;  %v77_v37 = vld [vmem:[#allocation2 + $0xd8] sm:$0xff]  ;;  %v384_v38 = vpack.c.bf16 %v162_v32, %v161_v31 }
  0x2e   :  { %357 = vmatprep.subr.bf16.mxu0 %v356_v15  ;;  %v381_v30 = vpack.c.bf16 %v160_v28, %v159_v27  ;;  %v59_v35 = vld [vmem:[#allocation2 + $0x48] sm:$0xff]  ;;  %v163_v39 = vld [vmem:[#allocation4 + $0x20] sm:$0xff]  ;;  %v368_v42 = vpack.c.bf16 %v77_v37, %v76_v36  ;;  %v60_v43 = vld [vmem:[#allocation2 + $0x50] sm:$0xff] }
  0x2f   :  { %v164_v40 = vld [vmem:[#allocation4 + $0x28] sm:$0xff]  ;;  %v366_v41 = vpack.c.bf16 %v59_v35, %v58_v34  ;;  %v61_v44 = vld [vmem:[#allocation2 + $0x58] sm:$0xff]  ;;  %v78_v45 = vld [vmem:[#allocation2 + $0xe0] sm:$0xff] }
  0x30   :  { %382 = vmatpush3.bf16.msra.mxu1 %v381_v30  ;;  %v79_v46 = vld [vmem:[#allocation2 + $0xe8] sm:$0xff]  ;;  %v387_v47 = vpack.c.bf16 %v164_v40, %v163_v39  ;;  %v165_v48 = vld [vmem:[#allocation4 + $0x30] sm:$0xff]  ;;  %v166_v49 = vld [vmem:[#allocation4 + $0x38] sm:$0xff]  ;;  %v370_v50 = vpack.c.bf16 %v61_v44, %v60_v43 }
  0x31   :  { %359 = vmatpush3.bf16.msra.mxu0 %v358_v20  ;;  %383 = vmatprep.subr.bf16.mxu1 %v463_v0  ;;  %v372_v51 = vpack.c.bf16 %v79_v46, %v78_v45  ;;  %v62_v52 = vld [vmem:[#allocation2 + $0x60] sm:$0xff]  ;;  %v63_v53 = vld [vmem:[#allocation2 + $0x68] sm:$0xff]  ;;  %v80_v54 = vld [vmem:[#allocation2 + $0xf0] sm:$0xff]  ;;  %v390_v56 = vpack.c.bf16 %v166_v49, %v165_v48 }
  0x32   :  { %361 = vmatprep.subr.bf16.mxu0 %v360_v21  ;;  %v81_v55 = vld [vmem:[#allocation2 + $0xf8] sm:$0xff]  ;;  %v167_v57 = vld [vmem:[#allocation4 + $0x40] sm:$0xff]  ;;  %v168_v58 = vld [vmem:[#allocation4 + $0x48] sm:$0xff]  ;;  %v374_v59 = vpack.c.bf16 %v63_v53, %v62_v52 }
  0x33   :  { %v376_v60 = vpack.c.bf16 %v81_v55, %v80_v54  ;;  %v64_v61 = vld [vmem:[#allocation2 + $0x70] sm:$0xff]  ;;  %v65_v62 = vld [vmem:[#allocation2 + $0x78] sm:$0xff]  ;;  %v393_v63 = vpack.c.bf16 %v168_v58, %v167_v57  ;;  %v171_v5 = vld [vmem:[#allocation4 + $0x60] sm:$0xff] }
  0x34   :  { %385 = vmatpush3.bf16.msra.mxu1 %v384_v38  ;;  %v169_v1 = vld [vmem:[#allocation4 + $0x50] sm:$0xff]  ;;  %v170_v2 = vld [vmem:[#allocation4 + $0x58] sm:$0xff]  ;;  %v378_v3 = vpack.c.bf16 %v65_v62, %v64_v61  ;;  %v172_v6 = vld [vmem:[#allocation4 + $0x68] sm:$0xff] }
  0x35   :  { %363 = vmatpush3.bf16.msra.mxu0 %v362_v29  ;;  %386 = vmatprep.subr.bf16.mxu1 %v463_v0  ;;  %v396_v4 = vpack.c.bf16 %v170_v2, %v169_v1  ;;  %v48_v7 = vld [vmem:[%s543_s0] sm:$0xff]  ;;  %v399_v8 = vpack.c.bf16 %v172_v6, %v171_v5  ;;  %v173_v9 = vld [vmem:[#allocation4 + $0x70] sm:$0xff]  ;;  %v174_v10 = vld [vmem:[#allocation4 + $0x78] sm:$0xff] }
  0x36   :  { %365 = vmatprep.subr.bf16.mxu0 %v364_v33  ;;  %v402_v11 = vpack.c.bf16 %v174_v10, %v173_v9  ;;  %v259_v14 = vld [vmem:[%s545_s2] ss:$0 sm:$0xff] }
  0x38   :  { %388 = vmatpush3.bf16.msra.mxu1 %v387_v47 }
  0x39   :  { %367 = vmatpush3.bf16.msra.mxu0 %v366_v41  ;;  %389 = vmatprep.subr.bf16.mxu1 %v463_v0 }
  0x3a   :  { %369 = vmatprep.subr.bf16.mxu0 %v368_v42 }
  0x3c   :  { %391 = vmatpush3.bf16.msra.mxu1 %v390_v56 }
  0x3d   :  { %371 = vmatpush3.bf16.msra.mxu0 %v370_v50  ;;  %392 = vmatprep.subr.bf16.mxu1 %v463_v0 }
  0x3e   :  { %373 = vmatprep.subr.bf16.mxu0 %v372_v51 }
  0x40   :  { %394 = vmatpush3.bf16.msra.mxu1 %v393_v63 }
  0x41   :  { %375 = vmatpush3.bf16.msra.mxu0 %v374_v59  ;;  %395 = vmatprep.subr.bf16.mxu1 %v463_v0 }
  0x42   :  { %377 = vmatprep.subr.bf16.mxu0 %v376_v60 }
  0x44   :  { %397 = vmatpush3.bf16.msra.mxu1 %v396_v4 }
  0x45   :  { %379 = vmatpush3.bf16.msra.mxu0 %v378_v3  ;;  %398 = vmatprep.subr.bf16.mxu1 %v463_v0 }
  0x48   :  { %154 = vmatmul.mubr.f32.vlgmr.msra.gmra.mrb[0].mxu0 %v48_v7  ;;  %400 = vmatpush3.bf16.msra.mxu1 %v399_v8 }
  0x49   :  { %401 = vmatprep.subr.bf16.mxu1 %v463_v0  ;;  %v260_v0 = vld [vmem:[%s547_s4] ss:$0 sm:$0xff] }
  0x4c   :  { %403 = vmatpush3.bf16.msra.mxu1 %v402_v11 }
 0x11b   :  { %v293_v13 = vpop.f32.mrb[0].mxu0 }
 0x11c   :  { %v294_v15 = vpop.f32.mrb[1].mxu0 }
 0x11d   :  { %v295_v16 = vadd.f32 %v294_v15, %v293_v13 }
 0x11f   :  { %v156_v17 = vadd.f32 %v295_v16, %v259_v14 }
 0x121   :  { %346 = vmatmul.mubr.f32.vlgmr.msra.gmra.mrb[0].mxu1 %v156_v17 }
 0x1f4   :  { %v248_v18 = vpop.f32.mrb[0].mxu1 }
 0x1f5   :  { %v249_v19 = vadd.f32 %v260_v0, %v248_v18  ;;  %v347_v20 = vpop.f32.mrb[1].mxu1 }
 0x1f7   :  { %252 = vst [vmem:[%s548_s5] sm:$0xff] %v249_v19 }
 0x1f8   :  { %257 = vsyncpa [#allocation3], 1 }
 0x1f9   :  { %258 = vsyncpa [#allocation5], 1 }

</bundles_post_ra>
